<compile_context>
chip_gen: v5e
topology: v5e:2x2
jax: 0.10.0
libtpu: 0.0.40
codegen_flags: <defaults>
</compile_context>

<pallas_src>
import functools

import jax
import jax.numpy as jnp
from jax.experimental import pallas as pl
from jax.experimental.pallas import tpu as pltpu

_EPS = 1e-5
_SUBLANE = 16  # bf16/int8 sublane-packed tile height


def _round_up(v, m):
    return (v + m - 1) // m * m


def _lane_pad(d, wide_mxu):
    """Lane-dim padding: 256-align on 256-wide MXUs when the true dim exceeds 128."""
    if wide_mxu and d > 128:
        return _round_up(d, 256)
    return _round_up(max(d, 1), 128)


@functools.lru_cache(maxsize=1)
def _chip_config():
    """Best-effort TPU-generation detection (never raises)."""
    kind = ""
    try:
        dev = jax.devices()[0]
        if dev.platform == "tpu":
            kind = (dev.device_kind or "").lower()
    except Exception:
        pass
    is_v5 = "v5" in kind
    is_v6 = "v6" in kind
    is_v7 = "v7" in kind
    use_int8 = (is_v5 or is_v6) and not is_v7     # int MXU on v5*/v6*; v7x is fp8-only
    wide_mxu = is_v6 or is_v7                     # 2x256^2 MXU
    num_cores = 2 if is_v7 else 1                 # v7x: 2 TensorCores per chip
    if is_v7 or not kind:
        vmem_cap = 64 << 20                       # conservative default
    else:
        vmem_cap = 128 << 20                      # v5e/v5p/v6e
    try:
        cap = getattr(pltpu.get_tpu_info(), "vmem_capacity_bytes", None)
        if cap:
            vmem_cap = int(cap)
    except Exception:
        pass
    return {"use_int8": use_int8, "wide_mxu": wide_mxu,
            "num_cores": num_cores, "vmem_cap": int(vmem_cap)}


def _weight_quant_int(w, weight_measure):
    """Per-tensor weight scale + ternary integer weights (no dequant applied)."""
    if weight_measure == "AbsMedian":
        s = jnp.median(jnp.abs(w))
    else:  # "AbsMean" (default BitNet b1.58)
        s = jnp.mean(jnp.abs(w))
    s = jnp.maximum(s, _EPS).astype(jnp.float32)
    wq = jnp.clip(jnp.round(w / s), -1.0, 1.0)  # ternary {-1, 0, 1}
    return s, wq


def _quantized_linear(x, wq_t, s_fold, bias, *, x_nonneg, use_int8):
    """y = act_quant(x) @ (wq_t * 127*s_fold) + bias, scales folded into the epilogue.

    x:      (TB, K) f32
    wq_t:   (K, N)  ternary, int8 or bf16 (pre-transposed, MXU orientation)
    s_fold: scalar  f32 = weight_scale / 127  (pre-folded on host, from SMEM)
    bias:   (1, N)  f32
    The matmul is exact: |Xq| <= 128 and ternary weights are exact in int8/bf16, and
    the MXU accumulates in int32/f32.
    """
    ax = x if x_nonneg else jnp.abs(x)
    rmax = jnp.maximum(jnp.max(ax, axis=-1, keepdims=True), _EPS)     # (TB, 1)
    xq = jnp.clip(jnp.round(x * (127.0 / rmax)), -128.0, 127.0)       # integer-valued
    if use_int8:
        acc = jnp.dot(xq.astype(jnp.int8), wq_t,
                      preferred_element_type=jnp.int32).astype(jnp.float32)
    else:
        acc = jnp.dot(xq.astype(jnp.bfloat16), wq_t,
                      preferred_element_type=jnp.float32)
    return acc * (rmax * s_fold) + bias


def _bitmlp_kernel(s_ref, x_ref, w1_ref, b1_ref, w2_ref, b2_ref, o_ref, *, use_int8):
    x = x_ref[...]                                                     # (TB, K1)
    h = _quantized_linear(x, w1_ref[...], s_ref[0], b1_ref[...],
                          x_nonneg=False, use_int8=use_int8)           # fc1
    h = jnp.maximum(h, 0.0)                                            # ReLU
    o_ref[...] = _quantized_linear(h, w2_ref[...], s_ref[1], b2_ref[...],
                                   x_nonneg=True, use_int8=use_int8)   # fc2


@functools.partial(
    jax.jit,
    static_argnames=("weight_measure", "block_b", "use_int8", "single_buffer",
                     "wide_mxu", "vmem_cap", "num_cores"))
def _bitmlp_impl(x, w1, b1, w2, b2, *, weight_measure, block_b, use_int8,
                 single_buffer, wide_mxu, vmem_cap, num_cores):
    B, n_in = x.shape
    n_hid = w1.shape[0]
    n_out = w2.shape[0]

    # ---- weight quantization: once, outside the kernel (also handles AbsMedian) ----
    s1, w1q = _weight_quant_int(w1, weight_measure)
    s2, w2q = _weight_quant_int(w2, weight_measure)

    # ---- lane/sublane-friendly padding ----
    K1 = _lane_pad(n_in, wide_mxu)
    N1 = _lane_pad(n_hid, wide_mxu)
    N2 = _lane_pad(n_out, wide_mxu)

    Bp_min = _round_up(B, _SUBLANE)
    TB = max(_SUBLANE, min(_round_up(block_b, _SUBLANE), Bp_min))
    # Ensure >= num_cores grid steps when the batch allows (v7x: 2 TensorCores).
    if num_cores > 1 and Bp_min >= num_cores * _SUBLANE:
        per_core = _round_up((Bp_min + num_cores - 1) // num_cores, _SUBLANE)
        TB = min(TB, max(_SUBLANE, per_core))

    wbytes = 1 if use_int8 else 2
    buf_mult = 1 if single_buffer else 2

    def est_vmem(tb):
        return (2 * tb * K1 * 4                                        # x tile, 2-buf
                + 2 * tb * N2 * 4                                      # out tile, 2-buf
                + buf_mult * ((K1 * N1 + N1 * N2) * wbytes + (N1 + N2) * 4)  # resident
                + tb * (K1 + N1) * wbytes                              # xq / hq
                + 3 * tb * N1 * 4)                                     # fc1 acc / h

    budget = int(0.85 * vmem_cap)
    while TB > _SUBLANE and est_vmem(TB) > budget:
        TB = max(_SUBLANE, _round_up(TB // 2, _SUBLANE))
    # TODO(synk): K/N weight tiling when the resident weights alone exceed the budget.

    Bp = _round_up(B, TB)

    # ---- pad / pack operands ----
    wdtype = jnp.int8 if use_int8 else jnp.bfloat16
    xp = jnp.zeros((Bp, K1), jnp.float32).at[:B, :n_in].set(x.astype(jnp.float32))
    w1t = jnp.zeros((K1, N1), wdtype).at[:n_in, :n_hid].set(w1q.T.astype(wdtype))
    w2t = jnp.zeros((N1, N2), wdtype).at[:n_hid, :n_out].set(w2q.T.astype(wdtype))
    b1p = jnp.zeros((1, N1), jnp.float32).at[0, :n_hid].set(b1.astype(jnp.float32))
    b2p = jnp.zeros((1, N2), jnp.float32).at[0, :n_out].set(b2.astype(jnp.float32))
    s_fold = jnp.stack([s1, s2]).astype(jnp.float32) * (1.0 / 127.0)   # (2,) SMEM

    # ---- cost / VMEM budgeting ----
    flops = 2 * Bp * (K1 * N1 + N1 * N2)
    bytes_accessed = (4 * Bp * K1 + 4 * Bp * N2
                      + wbytes * (K1 * N1 + N1 * N2) + 4 * (N1 + N2 + 2))
    cost = pl.CostEstimate(flops=flops, transcendentals=0,
                           bytes_accessed=bytes_accessed)
    vmem_limit = int(min(0.85 * vmem_cap, max(32 << 20, 2 * est_vmem(TB))))

    resident_kw = ({"pipeline_mode": pl.Buffered(buffer_count=1)}
                   if single_buffer else {})

    out_pad = pl.pallas_call(
        functools.partial(_bitmlp_kernel, use_int8=use_int8),
        out_shape=jax.ShapeDtypeStruct((Bp, N2), jnp.float32),
        grid=(Bp // TB,),
        in_specs=[
            pl.BlockSpec(memory_space=pltpu.MemorySpace.SMEM),              # s_fold
            pl.BlockSpec((TB, K1), lambda i: (i, 0)),                       # x (tiled)
            pl.BlockSpec((K1, N1), lambda i: (0, 0), **resident_kw),        # w1q.T
            pl.BlockSpec((1, N1), lambda i: (0, 0), **resident_kw),         # b1
            pl.BlockSpec((N1, N2), lambda i: (0, 0), **resident_kw),        # w2q.T
            pl.BlockSpec((1, N2), lambda i: (0, 0), **resident_kw),         # b2
        ],
        out_specs=pl.BlockSpec((TB, N2), lambda i: (i, 0)),
        compiler_params=pltpu.CompilerParams(
            dimension_semantics=("parallel",),
            vmem_limit_bytes=vmem_limit,
        ),
        cost_estimate=cost,
    )(s_fold, xp, w1t, b1p, w2t, b2p)

    return out_pad[:B, :n_out]


def bitmlp_forward(x, w1, b1, w2, b2, weight_measure="AbsMean", block_b=512):
    """BitMLP forward. Picks the generation-specific fast path, with a safe fallback."""
    cfg = _chip_config()
    try:
        out = _bitmlp_impl(x, w1, b1, w2, b2,
                           weight_measure=weight_measure, block_b=block_b,
                           use_int8=cfg["use_int8"], single_buffer=True,
                           wide_mxu=cfg["wide_mxu"], vmem_cap=cfg["vmem_cap"],
                           num_cores=cfg["num_cores"])
        return jax.block_until_ready(out)
    except Exception:
        # Conservative fallback: bf16 MXU path, default (double) buffering.
        out = _bitmlp_impl(x, w1, b1, w2, b2,
                           weight_measure=weight_measure, block_b=block_b,
                           use_int8=False, single_buffer=False,
                           wide_mxu=cfg["wide_mxu"], vmem_cap=cfg["vmem_cap"],
                           num_cores=cfg["num_cores"])
        return jax.block_until_ready(out)


# ---------------- pure-JAX references (no Pallas) ----------------

def bitmlp_reference_folded(x, w1, b1, w2, b2, weight_measure="AbsMean"):
    """Same folded-scale formulation as the kernel (algebraically identical BitLinear)."""
    s1, w1q = _weight_quant_int(w1, weight_measure)
    s2, w2q = _weight_quant_int(w2, weight_measure)

    def qlin(xx, wq, s, b, nonneg):
        ax = xx if nonneg else jnp.abs(xx)
        rmax = jnp.maximum(jnp.max(ax, axis=-1, keepdims=True), _EPS)
        xq = jnp.clip(jnp.round(xx * (127.0 / rmax)), -128.0, 127.0)
        acc = jnp.dot(xq.astype(jnp.bfloat16), wq.T.astype(jnp.bfloat16),
                      preferred_element_type=jnp.float32)              # exact integers
        return acc * (rmax * (s * (1.0 / 127.0))) + b

    h = jnp.maximum(qlin(x, w1q, s1, b1[None, :], False), 0.0)
    return qlin(h, w2q, s2, b2[None, :], True)


def bitmlp_reference_literal(x, w1, b1, w2, b2, weight_measure="AbsMean"):
    """Literal PyTorch-order BitLinear: dequantize both operands, then matmul."""
    def weight_quant(w):
        if weight_measure == "AbsMedian":
            s = jnp.median(jnp.abs(w))
        else:
            s = jnp.mean(jnp.abs(w))
        s = jnp.maximum(s, _EPS)
        return jnp.clip(jnp.round(w / s), -1.0, 1.0) * s

    def act_quant(xx):
        scale = 127.0 / jnp.maximum(
            jnp.max(jnp.abs(xx), axis=-1, keepdims=True), _EPS)
        return jnp.clip(jnp.round(xx * scale), -128.0, 127.0) / scale

    def bitlinear(xx, w, b):
        return jnp.dot(act_quant(xx), weight_quant(w).T,
                       precision=jax.lax.Precision.HIGHEST) + b

    h = jnp.maximum(bitlinear(x, w1, b1), 0.0)
    return bitlinear(h, w2, b2)


if __name__ == "__main__":
    # XOR-style BitMLP: n_inputs=2, n_hidden=32, n_outputs=2, bitlinear_bias=True.
    B, N_IN, N_HID, N_OUT = 8, 2, 32, 2

    key = jax.random.PRNGKey(0)
    kx, k1, kb1, k2, kb2 = jax.random.split(key, 5)

    x = jax.random.normal(kx, (B, N_IN), dtype=jnp.float32)
    # Deterministic parameter init (uniform, PyTorch-Linear-like bounds).
    w1 = jax.random.uniform(k1, (N_HID, N_IN), jnp.float32, -0.7, 0.7)
    b1 = jax.random.uniform(kb1, (N_HID,), jnp.float32, -0.7, 0.7)
    w2 = jax.random.uniform(k2, (N_OUT, N_HID), jnp.float32, -0.17, 0.17)
    b2 = jax.random.uniform(kb2, (N_OUT,), jnp.float32, -0.17, 0.17)

    out = bitmlp_forward(x, w1, b1, w2, b2, weight_measure="AbsMean")
    out = jax.block_until_ready(out)
    assert out.shape == (B, N_OUT)

    # Tight check: identical folded-scale math (exact integer matmuls in both).
    ref_folded = bitmlp_reference_folded(x, w1, b1, w2, b2)
    assert jnp.allclose(out, ref_folded, atol=1e-5, rtol=1e-5), \
        "mismatch vs folded reference (AbsMean)"

    # Sanity check vs the literal dequantize-then-matmul BitLinear ordering (small f32
    # rounding-order differences can flip a single 8-bit quantization step, hence the
    # looser tolerance).
    ref_literal = bitmlp_reference_literal(x, w1, b1, w2, b2)
    assert jnp.allclose(out, ref_literal, atol=2e-2, rtol=2e-2), \
        "mismatch vs literal BitLinear reference"

    # Also exercise the AbsMedian weight measure.
    out_med = bitmlp_forward(x, w1, b1, w2, b2, weight_measure="AbsMedian")
    out_med = jax.block_until_ready(out_med)
    ref_med = bitmlp_reference_folded(x, w1, b1, w2, b2, weight_measure="AbsMedian")
    assert jnp.allclose(out_med, ref_med, atol=1e-5, rtol=1e-5), \
        "mismatch vs folded reference (AbsMedian)"

    print("KERNEL_OK")
</pallas_src>

<mosaic_0001>
module attributes {stable_mosaic.version = 11 : i64} {
  func.func @_bitmlp_kernel(%arg0: i32, %arg1: memref<2xf32, #tpu.memory_space<smem>>, %arg2: memref<16x128xf32, #tpu.memory_space<vmem>>, %arg3: memref<128x128xbf16, #tpu.memory_space<vmem>>, %arg4: memref<1x128xf32, #tpu.memory_space<vmem>>, %arg5: memref<128x128xbf16, #tpu.memory_space<vmem>>, %arg6: memref<1x128xf32, #tpu.memory_space<vmem>>, %arg7: memref<16x128xf32, #tpu.memory_space<vmem>>) attributes {dimension_semantics = [#tpu.dimension_semantics<parallel>], iteration_bounds = array<i64: 1>, scalar_prefetch = 0 : i64, scratch_operands = 0 : i64, tpu.core_type = #tpu.core_type<tc>, window_params = [{transform_indices = @transform_0, window_bounds = array<i64: 2>}, {transform_indices = @transform_1, window_bounds = array<i64: 16, 128>}, {pipeline_mode = #tpu.pipeline_mode<synchronous>, transform_indices = @transform_2, window_bounds = array<i64: 128, 128>}, {pipeline_mode = #tpu.pipeline_mode<synchronous>, transform_indices = @transform_3, window_bounds = array<i64: 1, 128>}, {pipeline_mode = #tpu.pipeline_mode<synchronous>, transform_indices = @transform_4, window_bounds = array<i64: 128, 128>}, {pipeline_mode = #tpu.pipeline_mode<synchronous>, transform_indices = @transform_5, window_bounds = array<i64: 1, 128>}, {transform_indices = @transform_6, window_bounds = array<i64: 16, 128>}]} {
    %c0 = arith.constant 0 : index
    %c0_0 = arith.constant 0 : index
    %0 = vector.load %arg2[%c0, %c0_0] : memref<16x128xf32, #tpu.memory_space<vmem>>, vector<16x128xf32>
    %c0_1 = arith.constant 0 : index
    %c0_2 = arith.constant 0 : index
    %1 = vector.load %arg3[%c0_1, %c0_2] : memref<128x128xbf16, #tpu.memory_space<vmem>>, vector<128x128xbf16>
    %c0_3 = arith.constant 0 : index
    %2 = memref.load %arg1[%c0_3] : memref<2xf32, #tpu.memory_space<smem>>
    %c0_4 = arith.constant 0 : index
    %c0_5 = arith.constant 0 : index
    %3 = vector.load %arg4[%c0_4, %c0_5] : memref<1x128xf32, #tpu.memory_space<vmem>>, vector<1x128xf32>
    %4 = math.absf %0 : vector<16x128xf32>
    %cst = arith.constant dense<0xFF800000> : vector<16xf32>
    %5 = vector.multi_reduction <maximumf>, %4, %cst [1] : vector<16x128xf32> to vector<16xf32>
    %6 = vector.shape_cast %5 : vector<16xf32> to vector<16x1xf32>
    %cst_6 = arith.constant 9.99999974E-6 : f32
    %7 = vector.broadcast %cst_6 : f32 to vector<16x1xf32>
    %8 = arith.maximumf %6, %7 : vector<16x1xf32>
    %cst_7 = arith.constant 1.270000e+02 : f32
    %9 = vector.broadcast %cst_7 : f32 to vector<16x1xf32>
    %10 = arith.divf %9, %8 : vector<16x1xf32>
    %11 = vector.broadcast %10 : vector<16x1xf32> to vector<16x128xf32>
    %12 = arith.mulf %0, %11 : vector<16x128xf32>
    %13 = math.roundeven %12 : vector<16x128xf32>
    %cst_8 = arith.constant -1.280000e+02 : f32
    %cst_9 = arith.constant 1.270000e+02 : f32
    %14 = vector.broadcast %cst_8 : f32 to vector<16x128xf32>
    %15 = arith.maximumf %14, %13 : vector<16x128xf32>
    %16 = vector.broadcast %cst_9 : f32 to vector<16x128xf32>
    %17 = arith.minimumf %16, %15 : vector<16x128xf32>
    %18 = arith.truncf %17 : vector<16x128xf32> to vector<16x128xbf16>
    %cst_10 = arith.constant dense<0.000000e+00> : vector<16x128xf32>
    %19 = tpu.matmul %18, %1, %cst_10 {dimension_numbers = #tpu.dot_dimension_numbers<[1], [0], [0], [1], [0, 0, 1, 1], [], []>} : vector<16x128xbf16>, vector<128x128xbf16>, vector<16x128xf32> -> vector<16x128xf32>
    %20 = vector.broadcast %2 : f32 to vector<16x1xf32>
    %21 = arith.mulf %8, %20 : vector<16x1xf32>
    %22 = vector.broadcast %21 : vector<16x1xf32> to vector<16x128xf32>
    %23 = arith.mulf %19, %22 : vector<16x128xf32>
    %24 = vector.broadcast %3 : vector<1x128xf32> to vector<16x128xf32>
    %25 = arith.addf %23, %24 : vector<16x128xf32>
    %cst_11 = arith.constant 0.000000e+00 : f32
    %26 = vector.broadcast %cst_11 : f32 to vector<16x128xf32>
    %27 = arith.maximumf %25, %26 : vector<16x128xf32>
    %c0_12 = arith.constant 0 : index
    %c0_13 = arith.constant 0 : index
    %28 = vector.load %arg5[%c0_12, %c0_13] : memref<128x128xbf16, #tpu.memory_space<vmem>>, vector<128x128xbf16>
    %c1 = arith.constant 1 : index
    %29 = memref.load %arg1[%c1] : memref<2xf32, #tpu.memory_space<smem>>
    %c0_14 = arith.constant 0 : index
    %c0_15 = arith.constant 0 : index
    %30 = vector.load %arg6[%c0_14, %c0_15] : memref<1x128xf32, #tpu.memory_space<vmem>>, vector<1x128xf32>
    %cst_16 = arith.constant dense<0xFF800000> : vector<16xf32>
    %31 = vector.multi_reduction <maximumf>, %27, %cst_16 [1] : vector<16x128xf32> to vector<16xf32>
    %32 = vector.shape_cast %31 : vector<16xf32> to vector<16x1xf32>
    %cst_17 = arith.constant 9.99999974E-6 : f32
    %33 = vector.broadcast %cst_17 : f32 to vector<16x1xf32>
    %34 = arith.maximumf %32, %33 : vector<16x1xf32>
    %cst_18 = arith.constant 1.270000e+02 : f32
    %35 = vector.broadcast %cst_18 : f32 to vector<16x1xf32>
    %36 = arith.divf %35, %34 : vector<16x1xf32>
    %37 = vector.broadcast %36 : vector<16x1xf32> to vector<16x128xf32>
    %38 = arith.mulf %27, %37 : vector<16x128xf32>
    %39 = math.roundeven %38 : vector<16x128xf32>
    %cst_19 = arith.constant -1.280000e+02 : f32
    %cst_20 = arith.constant 1.270000e+02 : f32
    %40 = vector.broadcast %cst_19 : f32 to vector<16x128xf32>
    %41 = arith.maximumf %40, %39 : vector<16x128xf32>
    %42 = vector.broadcast %cst_20 : f32 to vector<16x128xf32>
    %43 = arith.minimumf %42, %41 : vector<16x128xf32>
    %44 = arith.truncf %43 : vector<16x128xf32> to vector<16x128xbf16>
    %cst_21 = arith.constant dense<0.000000e+00> : vector<16x128xf32>
    %45 = tpu.matmul %44, %28, %cst_21 {dimension_numbers = #tpu.dot_dimension_numbers<[1], [0], [0], [1], [0, 0, 1, 1], [], []>} : vector<16x128xbf16>, vector<128x128xbf16>, vector<16x128xf32> -> vector<16x128xf32>
    %46 = vector.broadcast %29 : f32 to vector<16x1xf32>
    %47 = arith.mulf %34, %46 : vector<16x1xf32>
    %48 = vector.broadcast %47 : vector<16x1xf32> to vector<16x128xf32>
    %49 = arith.mulf %45, %48 : vector<16x128xf32>
    %50 = vector.broadcast %30 : vector<1x128xf32> to vector<16x128xf32>
    %51 = arith.addf %49, %50 : vector<16x128xf32>
    %c0_22 = arith.constant 0 : index
    %c0_23 = arith.constant 0 : index
    %52 = vector.load %arg7[%c0_22, %c0_23] : memref<16x128xf32, #tpu.memory_space<vmem>>, vector<16x128xf32>
    tpu.vector_store %arg7[%c0_22, %c0_23], %51 {strides = array<i32>} : memref<16x128xf32, #tpu.memory_space<vmem>>, vector<16x128xf32>,
    return
  }
  func.func @transform_0(%arg0: i32) -> i32 {
    %c0_i32 = arith.constant 0 : i32
    %c0_i32_0 = arith.constant 0 : i32
    return %c0_i32 : i32
  }
  func.func @transform_1(%arg0: i32) -> (i32, i32) {
    %c0_i32 = arith.constant 0 : i32
    %c0_i32_0 = arith.constant 0 : i32
    return %arg0, %c0_i32 : i32, i32
  }
  func.func @transform_2(%arg0: i32) -> (i32, i32) {
    %c0_i32 = arith.constant 0 : i32
    %c0_i32_0 = arith.constant 0 : i32
    %c0_i32_1 = arith.constant 0 : i32
    return %c0_i32, %c0_i32_0 : i32, i32
  }
  func.func @transform_3(%arg0: i32) -> (i32, i32) {
    %c0_i32 = arith.constant 0 : i32
    %c0_i32_0 = arith.constant 0 : i32
    %c0_i32_1 = arith.constant 0 : i32
    return %c0_i32, %c0_i32_0 : i32, i32
  }
  func.func @transform_4(%arg0: i32) -> (i32, i32) {
    %c0_i32 = arith.constant 0 : i32
    %c0_i32_0 = arith.constant 0 : i32
    %c0_i32_1 = arith.constant 0 : i32
    return %c0_i32, %c0_i32_0 : i32, i32
  }
  func.func @transform_5(%arg0: i32) -> (i32, i32) {
    %c0_i32 = arith.constant 0 : i32
    %c0_i32_0 = arith.constant 0 : i32
    %c0_i32_1 = arith.constant 0 : i32
    return %c0_i32, %c0_i32_0 : i32, i32
  }
  func.func @transform_6(%arg0: i32) -> (i32, i32) {
    %c0_i32 = arith.constant 0 : i32
    %c0_i32_0 = arith.constant 0 : i32
    return %arg0, %c0_i32 : i32, i32
  }
}

module attributes {stable_mosaic.version = 11 : i64} {
  func.func @_bitmlp_kernel(%arg0: i32, %arg1: memref<2xf32, #tpu.memory_space<smem>>, %arg2: memref<16x128xf32, #tpu.memory_space<vmem>>, %arg3: memref<128x128xbf16, #tpu.memory_space<vmem>>, %arg4: memref<1x128xf32, #tpu.memory_space<vmem>>, %arg5: memref<128x128xbf16, #tpu.memory_space<vmem>>, %arg6: memref<1x128xf32, #tpu.memory_space<vmem>>, %arg7: memref<16x128xf32, #tpu.memory_space<vmem>>) attributes {dimension_semantics = [#tpu.dimension_semantics<parallel>], iteration_bounds = array<i64: 1>, scalar_prefetch = 0 : i64, scratch_operands = 0 : i64, tpu.core_type = #tpu.core_type<tc>, window_params = [{transform_indices = @transform_0, window_bounds = array<i64: 2>}, {transform_indices = @transform_1, window_bounds = array<i64: 16, 128>}, {pipeline_mode = #tpu.pipeline_mode<synchronous>, transform_indices = @transform_2, window_bounds = array<i64: 128, 128>}, {pipeline_mode = #tpu.pipeline_mode<synchronous>, transform_indices = @transform_3, window_bounds = array<i64: 1, 128>}, {pipeline_mode = #tpu.pipeline_mode<synchronous>, transform_indices = @transform_4, window_bounds = array<i64: 128, 128>}, {pipeline_mode = #tpu.pipeline_mode<synchronous>, transform_indices = @transform_5, window_bounds = array<i64: 1, 128>}, {transform_indices = @transform_6, window_bounds = array<i64: 16, 128>}]} {
    %c0 = arith.constant 0 : index
    %c0_0 = arith.constant 0 : index
    %0 = vector.load %arg2[%c0, %c0_0] : memref<16x128xf32, #tpu.memory_space<vmem>>, vector<16x128xf32>
    %c0_1 = arith.constant 0 : index
    %c0_2 = arith.constant 0 : index
    %1 = vector.load %arg3[%c0_1, %c0_2] : memref<128x128xbf16, #tpu.memory_space<vmem>>, vector<128x128xbf16>
    %c0_3 = arith.constant 0 : index
    %2 = memref.load %arg1[%c0_3] : memref<2xf32, #tpu.memory_space<smem>>
    %c0_4 = arith.constant 0 : index
    %c0_5 = arith.constant 0 : index
    %3 = vector.load %arg4[%c0_4, %c0_5] : memref<1x128xf32, #tpu.memory_space<vmem>>, vector<1x128xf32>
    %4 = math.absf %0 : vector<16x128xf32>
    %cst = arith.constant dense<0xFF800000> : vector<16xf32>
    %5 = vector.multi_reduction <maximumf>, %4, %cst [1] : vector<16x128xf32> to vector<16xf32>
    %6 = vector.shape_cast %5 : vector<16xf32> to vector<16x1xf32>
    %cst_6 = arith.constant 9.99999974E-6 : f32
    %7 = vector.broadcast %cst_6 : f32 to vector<16x1xf32>
    %8 = arith.maximumf %6, %7 : vector<16x1xf32>
    %cst_7 = arith.constant 1.270000e+02 : f32
    %9 = vector.broadcast %cst_7 : f32 to vector<16x1xf32>
    %10 = arith.divf %9, %8 : vector<16x1xf32>
    %11 = vector.broadcast %10 : vector<16x1xf32> to vector<16x128xf32>
    %12 = arith.mulf %0, %11 : vector<16x128xf32>
    %13 = math.roundeven %12 : vector<16x128xf32>
    %cst_8 = arith.constant -1.280000e+02 : f32
    %cst_9 = arith.constant 1.270000e+02 : f32
    %14 = vector.broadcast %cst_8 : f32 to vector<16x128xf32>
    %15 = arith.maximumf %14, %13 : vector<16x128xf32>
    %16 = vector.broadcast %cst_9 : f32 to vector<16x128xf32>
    %17 = arith.minimumf %16, %15 : vector<16x128xf32>
    %18 = arith.truncf %17 : vector<16x128xf32> to vector<16x128xbf16>
    %cst_10 = arith.constant dense<0.000000e+00> : vector<16x128xf32>
    %19 = tpu.matmul %18, %1, %cst_10 {dimension_numbers = #tpu.dot_dimension_numbers<[1], [0], [0], [1], [0, 0, 1, 1], [], []>} : vector<16x128xbf16>, vector<128x128xbf16>, vector<16x128xf32> -> vector<16x128xf32>
    %20 = vector.broadcast %2 : f32 to vector<16x1xf32>
    %21 = arith.mulf %8, %20 : vector<16x1xf32>
    %22 = vector.broadcast %21 : vector<16x1xf32> to vector<16x128xf32>
    %23 = arith.mulf %19, %22 : vector<16x128xf32>
    %24 = vector.broadcast %3 : vector<1x128xf32> to vector<16x128xf32>
    %25 = arith.addf %23, %24 : vector<16x128xf32>
    %cst_11 = arith.constant 0.000000e+00 : f32
    %26 = vector.broadcast %cst_11 : f32 to vector<16x128xf32>
    %27 = arith.maximumf %25, %26 : vector<16x128xf32>
    %c0_12 = arith.constant 0 : index
    %c0_13 = arith.constant 0 : index
    %28 = vector.load %arg5[%c0_12, %c0_13] : memref<128x128xbf16, #tpu.memory_space<vmem>>, vector<128x128xbf16>
    %c1 = arith.constant 1 : index
    %29 = memref.load %arg1[%c1] : memref<2xf32, #tpu.memory_space<smem>>
    %c0_14 = arith.constant 0 : index
    %c0_15 = arith.constant 0 : index
    %30 = vector.load %arg6[%c0_14, %c0_15] : memref<1x128xf32, #tpu.memory_space<vmem>>, vector<1x128xf32>
    %cst_16 = arith.constant dense<0xFF800000> : vector<16xf32>
    %31 = vector.multi_reduction <maximumf>, %27, %cst_16 [1] : vector<16x128xf32> to vector<16xf32>
    %32 = vector.shape_cast %31 : vector<16xf32> to vector<16x1xf32>
    %cst_17 = arith.constant 9.99999974E-6 : f32
    %33 = vector.broadcast %cst_17 : f32 to vector<16x1xf32>
    %34 = arith.maximumf %32, %33 : vector<16x1xf32>
    %cst_18 = arith.constant 1.270000e+02 : f32
    %35 = vector.broadcast %cst_18 : f32 to vector<16x1xf32>
    %36 = arith.divf %35, %34 : vector<16x1xf32>
    %37 = vector.broadcast %36 : vector<16x1xf32> to vector<16x128xf32>
    %38 = arith.mulf %27, %37 : vector<16x128xf32>
    %39 = math.roundeven %38 : vector<16x128xf32>
    %cst_19 = arith.constant -1.280000e+02 : f32
    %cst_20 = arith.constant 1.270000e+02 : f32
    %40 = vector.broadcast %cst_19 : f32 to vector<16x128xf32>
    %41 = arith.maximumf %40, %39 : vector<16x128xf32>
    %42 = vector.broadcast %cst_20 : f32 to vector<16x128xf32>
    %43 = arith.minimumf %42, %41 : vector<16x128xf32>
    %44 = arith.truncf %43 : vector<16x128xf32> to vector<16x128xbf16>
    %cst_21 = arith.constant dense<0.000000e+00> : vector<16x128xf32>
    %45 = tpu.matmul %44, %28, %cst_21 {dimension_numbers = #tpu.dot_dimension_numbers<[1], [0], [0], [1], [0, 0, 1, 1], [], []>} : vector<16x128xbf16>, vector<128x128xbf16>, vector<16x128xf32> -> vector<16x128xf32>
    %46 = vector.broadcast %29 : f32 to vector<16x1xf32>
    %47 = arith.mulf %34, %46 : vector<16x1xf32>
    %48 = vector.broadcast %47 : vector<16x1xf32> to vector<16x128xf32>
    %49 = arith.mulf %45, %48 : vector<16x128xf32>
    %50 = vector.broadcast %30 : vector<1x128xf32> to vector<16x128xf32>
    %51 = arith.addf %49, %50 : vector<16x128xf32>
    %c0_22 = arith.constant 0 : index
    %c0_23 = arith.constant 0 : index
    %52 = vector.load %arg7[%c0_22, %c0_23] : memref<16x128xf32, #tpu.memory_space<vmem>>, vector<16x128xf32>
    tpu.vector_store %arg7[%c0_22, %c0_23], %51 {strides = array<i32>} : memref<16x128xf32, #tpu.memory_space<vmem>>, vector<16x128xf32>,
    return
  }
  func.func @transform_0(%arg0: i32) -> i32 {
    %c0_i32 = arith.constant 0 : i32
    %c0_i32_0 = arith.constant 0 : i32
    return %c0_i32 : i32
  }
  func.func @transform_1(%arg0: i32) -> (i32, i32) {
    %c0_i32 = arith.constant 0 : i32
    %c0_i32_0 = arith.constant 0 : i32
    return %arg0, %c0_i32 : i32, i32
  }
  func.func @transform_2(%arg0: i32) -> (i32, i32) {
    %c0_i32 = arith.constant 0 : i32
    %c0_i32_0 = arith.constant 0 : i32
    %c0_i32_1 = arith.constant 0 : i32
    return %c0_i32, %c0_i32_0 : i32, i32
  }
  func.func @transform_3(%arg0: i32) -> (i32, i32) {
    %c0_i32 = arith.constant 0 : i32
    %c0_i32_0 = arith.constant 0 : i32
    %c0_i32_1 = arith.constant 0 : i32
    return %c0_i32, %c0_i32_0 : i32, i32
  }
  func.func @transform_4(%arg0: i32) -> (i32, i32) {
    %c0_i32 = arith.constant 0 : i32
    %c0_i32_0 = arith.constant 0 : i32
    %c0_i32_1 = arith.constant 0 : i32
    return %c0_i32, %c0_i32_0 : i32, i32
  }
  func.func @transform_5(%arg0: i32) -> (i32, i32) {
    %c0_i32 = arith.constant 0 : i32
    %c0_i32_0 = arith.constant 0 : i32
    %c0_i32_1 = arith.constant 0 : i32
    return %c0_i32, %c0_i32_0 : i32, i32
  }
  func.func @transform_6(%arg0: i32) -> (i32, i32) {
    %c0_i32 = arith.constant 0 : i32
    %c0_i32_0 = arith.constant 0 : i32
    return %arg0, %c0_i32 : i32, i32
  }
}

</mosaic_0001>

<bundles_post_ra>
// kernel: _bitmlp_impl.1
= control target key start
LH: loop header
LB: loop body
LE: loop exit
PB: predicated region body
PF: predicated region fallthrough
CT: control target
= control target key end

     0   :  { %11 = vsyncpa [#allocation3], 0  ;;  %s457_s24 = smov [#allocation2]   ;;  %s594_s0 = inlined_call_operand.vmem [shape: f32[2], index: 0, kind: input, shape index: {}]   ;;  %s595_s1 = inlined_call_operand.vmem [shape: f32[16,128], index: 1, kind: input, shape index: {}]   ;;  %s596_s2 = inlined_call_operand.vmem [shape: bf16[128,128], index: 2, kind: input, shape index: {}]   ;;  %s597_s3 = inlined_call_operand.vmem [shape: f32[1,128], index: 3, kind: input, shape index: {}]   ;;  %s598_s4 = inlined_call_operand.vmem [shape: bf16[128,128], index: 4, kind: input, shape index: {}]   ;;  %s599_s5 = inlined_call_operand.vmem [shape: f32[1,128], index: 5, kind: input, shape index: {}]   ;;  %s600_s6 = inlined_call_operand.vmem [shape: f32[16,128], index: 6, kind: output, shape index: {}]  }
   0x1   :  { %s17_s23 = sshll.u32 %s594_s0, 4  ;;  %s18_s23 = int_to_ptr.vmem [resolvable:$true] %s17_s23 }
   0x2   :  { %20 = dma.vmem_to_smem %s18_s23, 16, %s457_s24, [#allocation3]  }
   0x3   :  { %455 = dma.done.wait [#allocation3], 16  }
   0x4   :  { %456 = vsyncadd [#allocation3], 4294967280 }
   0x5   :  { %35 = sfence }
   0x6   :  { %v36_v0 = vld [vmem:[%s595_s1] sm:$0xff]  ;;  %v37_v2 = vld [vmem:[%s595_s1 + $0x8] sm:$0xff]  ;;  %v391_v4 = vld [vmem:[%s596_s2 + $0x38] sm:$0xff] }
   0x7   :  { %v56_v1 = vand.u32 2147483647, %v36_v0  ;;  %v57_v3 = vand.u32 2147483647, %v37_v2  ;;  %151 = vmatpush.bf16.msra.mxu0 %v391_v4  ;;  %v390_v5 = vld [vmem:[%s596_s2 + $0x30] sm:$0xff]  ;;  %v389_v6 = vld [vmem:[%s596_s2 + $0x28] sm:$0xff] }
   0x8   :  { %v388_v7 = vld [vmem:[%s596_s2 + $0x20] sm:$0xff]  ;;  %v387_v8 = vld [vmem:[%s596_s2 + $0x18] sm:$0xff]  ;;  %v386_v10 = vld [vmem:[%s596_s2 + $0x10] sm:$0xff] }
   0x9   :  { %58 = vmax.xlane.f32.xlu0 %v56_v1  ;;  %v385_v12 = vld [vmem:[%s596_s2 + $0x8] sm:$0xff]  ;;  %v384_v14 = vld [vmem:[%s596_s2] sm:$0xff]  ;;  %s54_s2 = sld [smem:[#allocation2]] }
   0xa   :  { %v433_v61 = vld [vmem:[%s597_s3] ss:$0 sm:$0xff] }
   0xb   :  { %152 = vmatpush.bf16.msra.mxu0 %v390_v5 }
   0xf   :  { %153 = vmatpush.bf16.msra.mxu0 %v389_v6  ;;  %v165_v59 = vstv %s54_s2 }
  0x11   :  { %60 = vmax.xlane.f32.xlu0 %v57_v3 }
  0x13   :  { %154 = vmatpush.bf16.msra.mxu0 %v388_v7  ;;  %v399_v7 = vld [vmem:[%s598_s4 + $0x38] sm:$0xff] }
  0x14   :  { %288 = vmatpush.bf16.msra.mxu1 %v399_v7 }
  0x17   :  { %155 = vmatpush.bf16.msra.mxu0 %v387_v8  ;;  %v398_v8 = vld [vmem:[%s598_s4 + $0x30] sm:$0xff] }
  0x18   :  { %289 = vmatpush.bf16.msra.mxu1 %v398_v8 }
  0x1b   :  { %156 = vmatpush.bf16.msra.mxu0 %v386_v10  ;;  %v396_v10 = vld [vmem:[%s598_s4 + $0x20] sm:$0xff] }
  0x1f   :  { %157 = vmatpush.bf16.msra.mxu0 %v385_v12 }
  0x23   :  { %158 = vmatpush.bf16.msra.mxu0 %v384_v14  ;;  %v394_v14 = vld [vmem:[%s598_s4 + $0x10] sm:$0xff] }
  0x7c   :  { %v59_v9 = vpop.xlane.xlu0 %58 }
  0x7d   :  { %v520_v11 = vmax.f32 %v59_v9, 1e-05  ;;  %v397_v9 = vld [vmem:[%s598_s4 + $0x28] sm:$0xff] }
  0x7e   :  { %290 = vmatpush.bf16.msra.mxu1 %v397_v9 }
  0x7f   :  { %435 = vrcp.f32 %v520_v11  ;;  %v75_v19 = vand.u32 2147483648, %v520_v11  ;;  %v73_v21 = vand.u32 2147483647, %v520_v11  ;;  %vm69_vm1 = vweird.f32 %v520_v11 }
  0x80   :  { %v166_v60 = vmul.f32 %v165_v59, %v520_v11 }
  0x81   :  { %v76_v24 = vor.u32 1.1754944e-38, %v75_v19  ;;  %vm74_vm3 = vcmp.eq.f32.partialorder %v73_v21, 8.507059e+37  ;;  %v392_v19 = vld [vmem:[%s598_s4] sm:$0xff] }
  0x82   :  { %291 = vmatpush.bf16.msra.mxu1 %v396_v10 }
  0x84   :  { %v61_v13 = vpop.xlane.xlu0 %60 }
  0x85   :  { %v436_v15 = vpop.eup %435  ;;  %v529_v16 = vmax.f32 %v61_v13, 1e-05 }
  0x86   :  { %v65_v17 = vmul.f32 %v436_v15, %v520_v11  ;;  %vm70_vm0 = vweird.f32 %v436_v15  ;;  %v395_v11 = vld [vmem:[%s598_s4 + $0x18] sm:$0xff] }
  0x87   :  { %437 = vrcp.f32 %v529_v16  ;;  %vm71_vm2 = vmor %vm69_vm1, %vm70_vm0  ;;  %v90_v30 = vand.u32 2147483648, %v529_v16  ;;  %v88_v32 = vand.u32 2147483647, %v529_v16  ;;  %vm84_vm5 = vweird.f32 %v529_v16  ;;  %292 = vmatpush.bf16.msra.mxu1 %v395_v11 }
  0x88   :  { %v66_v18 = vsub.f32 1.0, %v65_v17 }
  0x89   :  { %v91_v36 = vor.u32 1.1754944e-38, %v90_v30  ;;  %vm89_vm7 = vcmp.eq.f32.partialorder %v88_v32, 8.507059e+37 }
  0x8a   :  { %v67_v20 = vmul.f32 %v436_v15, %v66_v18 }
  0x8b   :  { %293 = vmatpush.bf16.msra.mxu1 %v394_v14 }
  0x8c   :  { %v68_v22 = vadd.f32 %v436_v15, %v67_v20 }
  0x8d   :  { %v438_v23 = vpop.eup %437 }
  0x8e   :  { %v80_v25 = vmul.f32 %v438_v23, %v529_v16  ;;  %v72_v26 = vsel %vm71_vm2, %v436_v15, %v68_v22  ;;  %vm85_vm4 = vweird.f32 %v438_v23  ;;  %v393_v15 = vld [vmem:[%s598_s4 + $0x8] sm:$0xff]  ;;  %s351_s4 = sld [smem:[#allocation2 + $0x1]] }
  0x8f   :  { %v77_v27 = vsel %vm74_vm3, %v76_v24, %v72_v26  ;;  %vm86_vm6 = vmor %vm84_vm5, %vm85_vm4  ;;  %294 = vmatpush.bf16.msra.mxu1 %v393_v15 }
  0x90   :  { %v81_v28 = vsub.f32 1.0, %v80_v25  ;;  %v78_v29 = vmul.f32 127.0, %v77_v27 }
  0x92   :  { %v82_v31 = vmul.f32 %v438_v23, %v81_v28  ;;  %v94_v33 = vmul.f32 %v78_v29, %v36_v0 }
  0x93   :  { %295 = vmatpush.bf16.msra.mxu1 %v392_v19 }
  0x94   :  { %v83_v34 = vadd.f32 %v438_v23, %v82_v31  ;;  %v402_v35 = vcvt.f32.s32 %v94_v33  ;;  %v405_v43 = vand.u32 2147483648, %v94_v33  ;;  %v400_v44 = vand.u32 2147483647, %v94_v33 }
  0x96   :  { %v87_v37 = vsel %vm86_vm6, %v438_v23, %v83_v34  ;;  %v403_v38 = vcvt.s32.f32 %v402_v35  ;;  %vm401_vm8 = vcmp.lt.f32.partialorder %v400_v44, 8388608.0 }
  0x97   :  { %v92_v39 = vsel %vm89_vm7, %v91_v36, %v87_v37 }
  0x98   :  { %v93_v40 = vmul.f32 127.0, %v92_v39  ;;  %v404_v41 = vand.u32 2147483647, %v403_v38 }
  0x9a   :  { %v95_v42 = vmul.f32 %v93_v40, %v37_v2  ;;  %v406_v45 = vor.u32 %v405_v43, %v404_v41  ;;  %v167_v2 = vmul.f32 %v165_v59, %v529_v16 }
  0x9c   :  { %v410_v46 = vcvt.f32.s32 %v95_v42  ;;  %v408_v48 = vand.u32 2147483647, %v95_v42  ;;  %v407_v49 = vsel %vm401_vm8, %v406_v45, %v94_v33  ;;  %v413_v51 = vand.u32 2147483648, %v95_v42 }
  0x9d   :  { %v98_v53 = vmax.f32 %v407_v49, -128.0 }
  0x9e   :  { %v411_v47 = vcvt.s32.f32 %v410_v46  ;;  %vm409_vm9 = vcmp.lt.f32.partialorder %v408_v48, 8388608.0 }
  0x9f   :  { %v100_v56 = vmin.f32 %v98_v53, 127.0 }
  0xa0   :  { %v412_v50 = vand.u32 2147483647, %v411_v47 }
  0xa2   :  { %v414_v52 = vor.u32 %v413_v51, %v412_v50 }
  0xa4   :  { %v415_v54 = vsel %vm409_vm9, %v414_v52, %v95_v42 }
  0xa5   :  { %v99_v55 = vmax.f32 %v415_v54, -128.0 }
  0xa7   :  { %v101_v57 = vmin.f32 %v99_v55, 127.0 }
  0xa9   :  { %v102_v58 = vpack.c.bf16 %v101_v57, %v100_v56 }
  0xab   :  { %159 = vmatmul.bf16.vlgmr.msra.gmra.mxu0 %v102_v58 }
 0x128   :  { %v160_v62 = vpop.f32.mrf.mxu0 }
 0x129   :  { %v168_v63 = vmul.f32 %v166_v60, %v160_v62  ;;  %v302_v62 = vstv %s351_s4 }
 0x12b   :  { %v173_v0 = vadd.f32 %v433_v61, %v168_v63 }
 0x12d   :  { %v175_v1 = vmax.f32 %v173_v0, 0.0  ;;  %v434_v0 = vld [vmem:[%s599_s5] ss:$0 sm:$0xff] }
 0x12f   :  { %195 = vmax.xlane.f32.xlu1 %v175_v1 }
 0x130   :  { %v162_v3 = vpop.f32.mrf.mxu0 }
 0x131   :  { %v169_v4 = vmul.f32 %v167_v2, %v162_v3 }
 0x133   :  { %v174_v5 = vadd.f32 %v433_v61, %v169_v4 }
 0x135   :  { %v176_v6 = vmax.f32 %v174_v5, 0.0 }
 0x137   :  { %197 = vmax.xlane.f32.xlu1 %v176_v6 }
 0x1a2   :  { %v196_v12 = vpop.xlane.xlu1 %195 }
 0x1a3   :  { %v560_v13 = vmax.f32 %v196_v12, 1e-05 }
 0x1a5   :  { %439 = vrcp.f32 %v560_v13  ;;  %v212_v22 = vand.u32 2147483648, %v560_v13  ;;  %v210_v24 = vand.u32 2147483647, %v560_v13  ;;  %vm206_vm11 = vweird.f32 %v560_v13 }
 0x1a6   :  { %v303_v63 = vmul.f32 %v302_v62, %v560_v13 }
 0x1a7   :  { %v213_v27 = vor.u32 1.1754944e-38, %v212_v22  ;;  %vm211_vm13 = vcmp.eq.f32.partialorder %v210_v24, 8.507059e+37 }
 0x1aa   :  { %v198_v16 = vpop.xlane.xlu1 %197 }
 0x1ab   :  { %v440_v17 = vpop.eup %439  ;;  %v569_v18 = vmax.f32 %v198_v16, 1e-05 }
 0x1ac   :  { %v202_v20 = vmul.f32 %v440_v17, %v560_v13  ;;  %vm207_vm10 = vweird.f32 %v440_v17 }
 0x1ad   :  { %441 = vrcp.f32 %v569_v18  ;;  %vm208_vm12 = vmor %vm206_vm11, %vm207_vm10  ;;  %v227_v33 = vand.u32 2147483648, %v569_v18  ;;  %v225_v35 = vand.u32 2147483647, %v569_v18  ;;  %vm221_vm15 = vweird.f32 %v569_v18 }
 0x1ae   :  { %v203_v21 = vsub.f32 1.0, %v202_v20  ;;  %v304_v4 = vmul.f32 %v302_v62, %v569_v18 }
 0x1af   :  { %v228_v39 = vor.u32 1.1754944e-38, %v227_v33  ;;  %vm226_vm1 = vcmp.eq.f32.partialorder %v225_v35, 8.507059e+37 }
 0x1b0   :  { %v204_v23 = vmul.f32 %v440_v17, %v203_v21 }
 0x1b2   :  { %v205_v25 = vadd.f32 %v440_v17, %v204_v23 }
 0x1b3   :  { %v442_v26 = vpop.eup %441 }
 0x1b4   :  { %v217_v28 = vmul.f32 %v442_v26, %v569_v18  ;;  %v209_v29 = vsel %vm208_vm12, %v440_v17, %v205_v25  ;;  %vm222_vm14 = vweird.f32 %v442_v26 }
 0x1b5   :  { %v214_v30 = vsel %vm211_vm13, %v213_v27, %v209_v29  ;;  %vm223_vm0 = vmor %vm221_vm15, %vm222_vm14 }
 0x1b6   :  { %v218_v31 = vsub.f32 1.0, %v217_v28  ;;  %v215_v32 = vmul.f32 127.0, %v214_v30 }
 0x1b8   :  { %v219_v34 = vmul.f32 %v442_v26, %v218_v31  ;;  %v231_v36 = vmul.f32 %v215_v32, %v175_v1 }
 0x1ba   :  { %v220_v37 = vadd.f32 %v442_v26, %v219_v34  ;;  %v418_v38 = vcvt.f32.s32 %v231_v36  ;;  %v421_v46 = vand.u32 2147483648, %v231_v36  ;;  %v416_v47 = vand.u32 2147483647, %v231_v36 }
 0x1bc   :  { %v224_v40 = vsel %vm223_vm0, %v442_v26, %v220_v37  ;;  %v419_v41 = vcvt.s32.f32 %v418_v38  ;;  %vm417_vm2 = vcmp.lt.f32.partialorder %v416_v47, 8388608.0 }
 0x1bd   :  { %v229_v42 = vsel %vm226_vm1, %v228_v39, %v224_v40 }
 0x1be   :  { %v230_v43 = vmul.f32 127.0, %v229_v42  ;;  %v420_v44 = vand.u32 2147483647, %v419_v41 }
 0x1c0   :  { %v232_v45 = vmul.f32 %v230_v43, %v176_v6  ;;  %v422_v48 = vor.u32 %v421_v46, %v420_v44 }
 0x1c2   :  { %v426_v49 = vcvt.f32.s32 %v232_v45  ;;  %v424_v51 = vand.u32 2147483647, %v232_v45  ;;  %v423_v52 = vsel %vm417_vm2, %v422_v48, %v231_v36  ;;  %v429_v54 = vand.u32 2147483648, %v232_v45 }
 0x1c3   :  { %v235_v56 = vmax.f32 %v423_v52, -128.0 }
 0x1c4   :  { %v427_v50 = vcvt.s32.f32 %v426_v49  ;;  %vm425_vm3 = vcmp.lt.f32.partialorder %v424_v51, 8388608.0 }
 0x1c5   :  { %v237_v59 = vmin.f32 %v235_v56, 127.0 }
 0x1c6   :  { %v428_v53 = vand.u32 2147483647, %v427_v50 }
 0x1c8   :  { %v430_v55 = vor.u32 %v429_v54, %v428_v53 }
 0x1ca   :  { %v431_v57 = vsel %vm425_vm3, %v430_v55, %v232_v45 }
 0x1cb   :  { %v236_v58 = vmax.f32 %v431_v57, -128.0 }
 0x1cd   :  { %v238_v60 = vmin.f32 %v236_v58, 127.0 }
 0x1cf   :  { %v239_v61 = vpack.c.bf16 %v238_v60, %v237_v59 }
 0x1d1   :  { %296 = vmatmul.bf16.vlgmr.msra.gmra.mxu1 %v239_v61 }
 0x24e   :  { %v297_v1 = vpop.f32.mrf.mxu1 }
 0x24f   :  { %v305_v2 = vmul.f32 %v303_v63, %v297_v1 }
 0x251   :  { %v310_v3 = vadd.f32 %v434_v0, %v305_v2 }
 0x253   :  { %312 = vst [vmem:[%s600_s6] sm:$0xff] %v310_v3 }
 0x256   :  { %v299_v5 = vpop.f32.mrf.mxu1 }
 0x257   :  { %v306_v6 = vmul.f32 %v304_v4, %v299_v5 }
 0x259   :  { %v311_v7 = vadd.f32 %v434_v0, %v306_v6 }
 0x25b   :  { %313 = vst [vmem:[%s600_s6 + $0x8] sm:$0xff] %v311_v7 }
 0x25c   :  { %318 = vsyncpa [#allocation3], 1 }

// kernel: _bitmlp_impl.1
= control target key start
LH: loop header
LB: loop body
LE: loop exit
PB: predicated region body
PF: predicated region fallthrough
CT: control target
= control target key end

     0   :  { %11 = vsyncpa [#allocation3], 0  ;;  %s457_s24 = smov [#allocation2]   ;;  %s594_s0 = inlined_call_operand.vmem [shape: f32[2], index: 0, kind: input, shape index: {}]   ;;  %s595_s1 = inlined_call_operand.vmem [shape: f32[16,128], index: 1, kind: input, shape index: {}]   ;;  %s596_s2 = inlined_call_operand.vmem [shape: bf16[128,128], index: 2, kind: input, shape index: {}]   ;;  %s597_s3 = inlined_call_operand.vmem [shape: f32[1,128], index: 3, kind: input, shape index: {}]   ;;  %s598_s4 = inlined_call_operand.vmem [shape: bf16[128,128], index: 4, kind: input, shape index: {}]   ;;  %s599_s5 = inlined_call_operand.vmem [shape: f32[1,128], index: 5, kind: input, shape index: {}]   ;;  %s600_s6 = inlined_call_operand.vmem [shape: f32[16,128], index: 6, kind: output, shape index: {}]  }
   0x1   :  { %s17_s23 = sshll.u32 %s594_s0, 4  ;;  %s18_s23 = int_to_ptr.vmem [resolvable:$true] %s17_s23 }
   0x2   :  { %20 = dma.vmem_to_smem %s18_s23, 16, %s457_s24, [#allocation3]  }
   0x3   :  { %455 = dma.done.wait [#allocation3], 16  }
   0x4   :  { %456 = vsyncadd [#allocation3], 4294967280 }
   0x5   :  { %35 = sfence }
   0x6   :  { %v36_v0 = vld [vmem:[%s595_s1] sm:$0xff]  ;;  %v37_v2 = vld [vmem:[%s595_s1 + $0x8] sm:$0xff]  ;;  %v391_v4 = vld [vmem:[%s596_s2 + $0x38] sm:$0xff] }
   0x7   :  { %v56_v1 = vand.u32 2147483647, %v36_v0  ;;  %v57_v3 = vand.u32 2147483647, %v37_v2  ;;  %151 = vmatpush.bf16.msra.mxu0 %v391_v4  ;;  %v390_v5 = vld [vmem:[%s596_s2 + $0x30] sm:$0xff]  ;;  %v389_v6 = vld [vmem:[%s596_s2 + $0x28] sm:$0xff] }
   0x8   :  { %v388_v7 = vld [vmem:[%s596_s2 + $0x20] sm:$0xff]  ;;  %v387_v8 = vld [vmem:[%s596_s2 + $0x18] sm:$0xff]  ;;  %v386_v10 = vld [vmem:[%s596_s2 + $0x10] sm:$0xff] }
   0x9   :  { %58 = vmax.xlane.f32.xlu0 %v56_v1  ;;  %v385_v12 = vld [vmem:[%s596_s2 + $0x8] sm:$0xff]  ;;  %v384_v14 = vld [vmem:[%s596_s2] sm:$0xff]  ;;  %s54_s2 = sld [smem:[#allocation2]] }
   0xa   :  { %v433_v61 = vld [vmem:[%s597_s3] ss:$0 sm:$0xff] }
   0xb   :  { %152 = vmatpush.bf16.msra.mxu0 %v390_v5 }
   0xf   :  { %153 = vmatpush.bf16.msra.mxu0 %v389_v6  ;;  %v165_v59 = vstv %s54_s2 }
  0x11   :  { %60 = vmax.xlane.f32.xlu0 %v57_v3 }
  0x13   :  { %154 = vmatpush.bf16.msra.mxu0 %v388_v7  ;;  %v399_v7 = vld [vmem:[%s598_s4 + $0x38] sm:$0xff] }
  0x14   :  { %288 = vmatpush.bf16.msra.mxu1 %v399_v7 }
  0x17   :  { %155 = vmatpush.bf16.msra.mxu0 %v387_v8  ;;  %v398_v8 = vld [vmem:[%s598_s4 + $0x30] sm:$0xff] }
  0x18   :  { %289 = vmatpush.bf16.msra.mxu1 %v398_v8 }
  0x1b   :  { %156 = vmatpush.bf16.msra.mxu0 %v386_v10  ;;  %v396_v10 = vld [vmem:[%s598_s4 + $0x20] sm:$0xff] }
  0x1f   :  { %157 = vmatpush.bf16.msra.mxu0 %v385_v12 }
  0x23   :  { %158 = vmatpush.bf16.msra.mxu0 %v384_v14  ;;  %v394_v14 = vld [vmem:[%s598_s4 + $0x10] sm:$0xff] }
  0x7c   :  { %v59_v9 = vpop.xlane.xlu0 %58 }
  0x7d   :  { %v520_v11 = vmax.f32 %v59_v9, 1e-05  ;;  %v397_v9 = vld [vmem:[%s598_s4 + $0x28] sm:$0xff] }
  0x7e   :  { %290 = vmatpush.bf16.msra.mxu1 %v397_v9 }
  0x7f   :  { %435 = vrcp.f32 %v520_v11  ;;  %v75_v19 = vand.u32 2147483648, %v520_v11  ;;  %v73_v21 = vand.u32 2147483647, %v520_v11  ;;  %vm69_vm1 = vweird.f32 %v520_v11 }
  0x80   :  { %v166_v60 = vmul.f32 %v165_v59, %v520_v11 }
  0x81   :  { %v76_v24 = vor.u32 1.1754944e-38, %v75_v19  ;;  %vm74_vm3 = vcmp.eq.f32.partialorder %v73_v21, 8.507059e+37  ;;  %v392_v19 = vld [vmem:[%s598_s4] sm:$0xff] }
  0x82   :  { %291 = vmatpush.bf16.msra.mxu1 %v396_v10 }
  0x84   :  { %v61_v13 = vpop.xlane.xlu0 %60 }
  0x85   :  { %v436_v15 = vpop.eup %435  ;;  %v529_v16 = vmax.f32 %v61_v13, 1e-05 }
  0x86   :  { %v65_v17 = vmul.f32 %v436_v15, %v520_v11  ;;  %vm70_vm0 = vweird.f32 %v436_v15  ;;  %v395_v11 = vld [vmem:[%s598_s4 + $0x18] sm:$0xff] }
  0x87   :  { %437 = vrcp.f32 %v529_v16  ;;  %vm71_vm2 = vmor %vm69_vm1, %vm70_vm0  ;;  %v90_v30 = vand.u32 2147483648, %v529_v16  ;;  %v88_v32 = vand.u32 2147483647, %v529_v16  ;;  %vm84_vm5 = vweird.f32 %v529_v16  ;;  %292 = vmatpush.bf16.msra.mxu1 %v395_v11 }
  0x88   :  { %v66_v18 = vsub.f32 1.0, %v65_v17 }
  0x89   :  { %v91_v36 = vor.u32 1.1754944e-38, %v90_v30  ;;  %vm89_vm7 = vcmp.eq.f32.partialorder %v88_v32, 8.507059e+37 }
  0x8a   :  { %v67_v20 = vmul.f32 %v436_v15, %v66_v18 }
  0x8b   :  { %293 = vmatpush.bf16.msra.mxu1 %v394_v14 }
  0x8c   :  { %v68_v22 = vadd.f32 %v436_v15, %v67_v20 }
  0x8d   :  { %v438_v23 = vpop.eup %437 }
  0x8e   :  { %v80_v25 = vmul.f32 %v438_v23, %v529_v16  ;;  %v72_v26 = vsel %vm71_vm2, %v436_v15, %v68_v22  ;;  %vm85_vm4 = vweird.f32 %v438_v23  ;;  %v393_v15 = vld [vmem:[%s598_s4 + $0x8] sm:$0xff]  ;;  %s351_s4 = sld [smem:[#allocation2 + $0x1]] }
  0x8f   :  { %v77_v27 = vsel %vm74_vm3, %v76_v24, %v72_v26  ;;  %vm86_vm6 = vmor %vm84_vm5, %vm85_vm4  ;;  %294 = vmatpush.bf16.msra.mxu1 %v393_v15 }
  0x90   :  { %v81_v28 = vsub.f32 1.0, %v80_v25  ;;  %v78_v29 = vmul.f32 127.0, %v77_v27 }
  0x92   :  { %v82_v31 = vmul.f32 %v438_v23, %v81_v28  ;;  %v94_v33 = vmul.f32 %v78_v29, %v36_v0 }
  0x93   :  { %295 = vmatpush.bf16.msra.mxu1 %v392_v19 }
  0x94   :  { %v83_v34 = vadd.f32 %v438_v23, %v82_v31  ;;  %v402_v35 = vcvt.f32.s32 %v94_v33  ;;  %v405_v43 = vand.u32 2147483648, %v94_v33  ;;  %v400_v44 = vand.u32 2147483647, %v94_v33 }
  0x96   :  { %v87_v37 = vsel %vm86_vm6, %v438_v23, %v83_v34  ;;  %v403_v38 = vcvt.s32.f32 %v402_v35  ;;  %vm401_vm8 = vcmp.lt.f32.partialorder %v400_v44, 8388608.0 }
  0x97   :  { %v92_v39 = vsel %vm89_vm7, %v91_v36, %v87_v37 }
  0x98   :  { %v93_v40 = vmul.f32 127.0, %v92_v39  ;;  %v404_v41 = vand.u32 2147483647, %v403_v38 }
  0x9a   :  { %v95_v42 = vmul.f32 %v93_v40, %v37_v2  ;;  %v406_v45 = vor.u32 %v405_v43, %v404_v41  ;;  %v167_v2 = vmul.f32 %v165_v59, %v529_v16 }
  0x9c   :  { %v410_v46 = vcvt.f32.s32 %v95_v42  ;;  %v408_v48 = vand.u32 2147483647, %v95_v42  ;;  %v407_v49 = vsel %vm401_vm8, %v406_v45, %v94_v33  ;;  %v413_v51 = vand.u32 2147483648, %v95_v42 }
  0x9d   :  { %v98_v53 = vmax.f32 %v407_v49, -128.0 }
  0x9e   :  { %v411_v47 = vcvt.s32.f32 %v410_v46  ;;  %vm409_vm9 = vcmp.lt.f32.partialorder %v408_v48, 8388608.0 }
  0x9f   :  { %v100_v56 = vmin.f32 %v98_v53, 127.0 }
  0xa0   :  { %v412_v50 = vand.u32 2147483647, %v411_v47 }
  0xa2   :  { %v414_v52 = vor.u32 %v413_v51, %v412_v50 }
  0xa4   :  { %v415_v54 = vsel %vm409_vm9, %v414_v52, %v95_v42 }
  0xa5   :  { %v99_v55 = vmax.f32 %v415_v54, -128.0 }
  0xa7   :  { %v101_v57 = vmin.f32 %v99_v55, 127.0 }
  0xa9   :  { %v102_v58 = vpack.c.bf16 %v101_v57, %v100_v56 }
  0xab   :  { %159 = vmatmul.bf16.vlgmr.msra.gmra.mxu0 %v102_v58 }
 0x128   :  { %v160_v62 = vpop.f32.mrf.mxu0 }
 0x129   :  { %v168_v63 = vmul.f32 %v166_v60, %v160_v62  ;;  %v302_v62 = vstv %s351_s4 }
 0x12b   :  { %v173_v0 = vadd.f32 %v433_v61, %v168_v63 }
 0x12d   :  { %v175_v1 = vmax.f32 %v173_v0, 0.0  ;;  %v434_v0 = vld [vmem:[%s599_s5] ss:$0 sm:$0xff] }
 0x12f   :  { %195 = vmax.xlane.f32.xlu1 %v175_v1 }
 0x130   :  { %v162_v3 = vpop.f32.mrf.mxu0 }
 0x131   :  { %v169_v4 = vmul.f32 %v167_v2, %v162_v3 }
 0x133   :  { %v174_v5 = vadd.f32 %v433_v61, %v169_v4 }
 0x135   :  { %v176_v6 = vmax.f32 %v174_v5, 0.0 }
 0x137   :  { %197 = vmax.xlane.f32.xlu1 %v176_v6 }
 0x1a2   :  { %v196_v12 = vpop.xlane.xlu1 %195 }
 0x1a3   :  { %v560_v13 = vmax.f32 %v196_v12, 1e-05 }
 0x1a5   :  { %439 = vrcp.f32 %v560_v13  ;;  %v212_v22 = vand.u32 2147483648, %v560_v13  ;;  %v210_v24 = vand.u32 2147483647, %v560_v13  ;;  %vm206_vm11 = vweird.f32 %v560_v13 }
 0x1a6   :  { %v303_v63 = vmul.f32 %v302_v62, %v560_v13 }
 0x1a7   :  { %v213_v27 = vor.u32 1.1754944e-38, %v212_v22  ;;  %vm211_vm13 = vcmp.eq.f32.partialorder %v210_v24, 8.507059e+37 }
 0x1aa   :  { %v198_v16 = vpop.xlane.xlu1 %197 }
 0x1ab   :  { %v440_v17 = vpop.eup %439  ;;  %v569_v18 = vmax.f32 %v198_v16, 1e-05 }
 0x1ac   :  { %v202_v20 = vmul.f32 %v440_v17, %v560_v13  ;;  %vm207_vm10 = vweird.f32 %v440_v17 }
 0x1ad   :  { %441 = vrcp.f32 %v569_v18  ;;  %vm208_vm12 = vmor %vm206_vm11, %vm207_vm10  ;;  %v227_v33 = vand.u32 2147483648, %v569_v18  ;;  %v225_v35 = vand.u32 2147483647, %v569_v18  ;;  %vm221_vm15 = vweird.f32 %v569_v18 }
 0x1ae   :  { %v203_v21 = vsub.f32 1.0, %v202_v20  ;;  %v304_v4 = vmul.f32 %v302_v62, %v569_v18 }
 0x1af   :  { %v228_v39 = vor.u32 1.1754944e-38, %v227_v33  ;;  %vm226_vm1 = vcmp.eq.f32.partialorder %v225_v35, 8.507059e+37 }
 0x1b0   :  { %v204_v23 = vmul.f32 %v440_v17, %v203_v21 }
 0x1b2   :  { %v205_v25 = vadd.f32 %v440_v17, %v204_v23 }
 0x1b3   :  { %v442_v26 = vpop.eup %441 }
 0x1b4   :  { %v217_v28 = vmul.f32 %v442_v26, %v569_v18  ;;  %v209_v29 = vsel %vm208_vm12, %v440_v17, %v205_v25  ;;  %vm222_vm14 = vweird.f32 %v442_v26 }
 0x1b5   :  { %v214_v30 = vsel %vm211_vm13, %v213_v27, %v209_v29  ;;  %vm223_vm0 = vmor %vm221_vm15, %vm222_vm14 }
 0x1b6   :  { %v218_v31 = vsub.f32 1.0, %v217_v28  ;;  %v215_v32 = vmul.f32 127.0, %v214_v30 }
 0x1b8   :  { %v219_v34 = vmul.f32 %v442_v26, %v218_v31  ;;  %v231_v36 = vmul.f32 %v215_v32, %v175_v1 }
 0x1ba   :  { %v220_v37 = vadd.f32 %v442_v26, %v219_v34  ;;  %v418_v38 = vcvt.f32.s32 %v231_v36  ;;  %v421_v46 = vand.u32 2147483648, %v231_v36  ;;  %v416_v47 = vand.u32 2147483647, %v231_v36 }
 0x1bc   :  { %v224_v40 = vsel %vm223_vm0, %v442_v26, %v220_v37  ;;  %v419_v41 = vcvt.s32.f32 %v418_v38  ;;  %vm417_vm2 = vcmp.lt.f32.partialorder %v416_v47, 8388608.0 }
 0x1bd   :  { %v229_v42 = vsel %vm226_vm1, %v228_v39, %v224_v40 }
 0x1be   :  { %v230_v43 = vmul.f32 127.0, %v229_v42  ;;  %v420_v44 = vand.u32 2147483647, %v419_v41 }
 0x1c0   :  { %v232_v45 = vmul.f32 %v230_v43, %v176_v6  ;;  %v422_v48 = vor.u32 %v421_v46, %v420_v44 }
 0x1c2   :  { %v426_v49 = vcvt.f32.s32 %v232_v45  ;;  %v424_v51 = vand.u32 2147483647, %v232_v45  ;;  %v423_v52 = vsel %vm417_vm2, %v422_v48, %v231_v36  ;;  %v429_v54 = vand.u32 2147483648, %v232_v45 }
 0x1c3   :  { %v235_v56 = vmax.f32 %v423_v52, -128.0 }
 0x1c4   :  { %v427_v50 = vcvt.s32.f32 %v426_v49  ;;  %vm425_vm3 = vcmp.lt.f32.partialorder %v424_v51, 8388608.0 }
 0x1c5   :  { %v237_v59 = vmin.f32 %v235_v56, 127.0 }
 0x1c6   :  { %v428_v53 = vand.u32 2147483647, %v427_v50 }
 0x1c8   :  { %v430_v55 = vor.u32 %v429_v54, %v428_v53 }
 0x1ca   :  { %v431_v57 = vsel %vm425_vm3, %v430_v55, %v232_v45 }
 0x1cb   :  { %v236_v58 = vmax.f32 %v431_v57, -128.0 }
 0x1cd   :  { %v238_v60 = vmin.f32 %v236_v58, 127.0 }
 0x1cf   :  { %v239_v61 = vpack.c.bf16 %v238_v60, %v237_v59 }
 0x1d1   :  { %296 = vmatmul.bf16.vlgmr.msra.gmra.mxu1 %v239_v61 }
 0x24e   :  { %v297_v1 = vpop.f32.mrf.mxu1 }
 0x24f   :  { %v305_v2 = vmul.f32 %v303_v63, %v297_v1 }
 0x251   :  { %v310_v3 = vadd.f32 %v434_v0, %v305_v2 }
 0x253   :  { %312 = vst [vmem:[%s600_s6] sm:$0xff] %v310_v3 }
 0x256   :  { %v299_v5 = vpop.f32.mrf.mxu1 }
 0x257   :  { %v306_v6 = vmul.f32 %v304_v4, %v299_v5 }
 0x259   :  { %v311_v7 = vadd.f32 %v434_v0, %v306_v6 }
 0x25b   :  { %313 = vst [vmem:[%s600_s6 + $0x8] sm:$0xff] %v311_v7 }
 0x25c   :  { %318 = vsyncpa [#allocation3], 1 }

</bundles_post_ra>
